<compile_context>
chip_gen: v5e
topology: v5e:2x2
jax: 0.10.0
libtpu: 0.0.40
codegen_flags: <defaults>
</compile_context>

<pallas_src>
import functools

import jax
import jax.numpy as jnp
from jax.experimental import pallas as pl
from jax.experimental.pallas import tpu as pltpu


def _round_up(x, m):
    return ((x + m - 1) // m) * m


def _device_budget():
    """(scoped VMEM budget in bytes, TensorCores per chip)."""
    try:
        kind = jax.devices()[0].device_kind.lower()
    except Exception:
        kind = ""
    if "v7" in kind or "7x" in kind:
        return 48 * 1024 * 1024, 2          # 64 MiB VMEM / TC, 2 TCs per chip
    if any(s in kind for s in ("v6", "v5", "v4")):
        return 96 * 1024 * 1024, 1          # 128 MiB VMEM, 1 TC
    return 48 * 1024 * 1024, 1              # unknown: stay conservative


def _resident_spec(block_shape, index_map, single_buffer):
    """BlockSpec for a grid-invariant operand; single-buffer it when it is big
    enough to matter (halves its VMEM footprint, important on v7x)."""
    if single_buffer:
        try:
            return pl.BlockSpec(block_shape, index_map,
                                pipeline_mode=pl.Buffered(1))
        except Exception:
            pass  # older jax without pipeline_mode / Buffered: fall back
    return pl.BlockSpec(block_shape, index_map)


def _pick_spatial_tile(HW, N, C, x_bytes, w_bytes, vmem_budget, cores, ktile):
    """Largest lane tile (multiple of 128) whose double-buffered blocks fit in
    roughly half the VMEM budget; capped at HW (rounded up to 128)."""
    cin = ktile if ktile else C
    # Bytes per 128-lane column: 2x-buffered x block + 2x-buffered out block
    # (+ f32 accumulator column for the K-tiled path).
    per_col = 128 * (2 * cin * x_bytes + 2 * C * x_bytes + (C * 4 if ktile else 0))
    # Grid-(spatial)-invariant residents: weight block(s) + padded bias block.
    wblk = C * cin * w_bytes * (2 if ktile else 1)
    resident = wblk + 8 * 128 * 4
    avail = max(vmem_budget // 2 - resident, per_col)
    t = max(128, (avail // per_col) * 128)
    t = min(t, _round_up(HW, 128))
    # Keep both v7x TensorCores busy when the batch axis alone cannot.
    if cores > 1 and N == 1 and HW > 128:
        t = min(t, max(128, _round_up(pl.cdiv(HW, 2), 128)))
    return int(t)


def _residual_kernel(x_ref, w_ref, b_ref, o_ref, *, use_vpu_madd, matmul_dtype):
    # x_ref: (1, C, T)  spatial tile of one image; lane dim = spatial (dense)
    # w_ref: (C, C)     1x1-conv weight (C_out, C_in), VMEM-resident
    # b_ref: (C, 1)     f32 bias column -> broadcasts along the lane dim
    x = x_ref[0]                                      # (C, T)
    xf = x.astype(jnp.float32)
    if use_vpu_madd:
        # Tiny-C: C broadcast multiply-adds on the VPU; avoids MXU push/pop
        # latency for a ~C/256-utilized contraction (kernel is HBM-bound here).
        w = w_ref[...].astype(jnp.float32)            # (C, C)
        y = jnp.zeros_like(xf)
        for k in range(x.shape[0]):                   # static unroll, C small
            y = y + w[:, k:k + 1] * xf[k:k + 1, :]
    else:
        lhs = w_ref[...]
        rhs = x
        if matmul_dtype is not None:                  # bf16 MXU, f32 accumulate
            lhs = lhs.astype(matmul_dtype)
            rhs = rhs.astype(matmul_dtype)
        y = jnp.dot(lhs, rhs, preferred_element_type=jnp.float32)
    # drop_path_rate == 0.0 -> Identity; fuse bias + residual (VPU filler).
    o_ref[0] = (y + b_ref[...] + xf).astype(o_ref.dtype)


def _residual_kernel_ktiled(x_ref, w_ref, b_ref, o_ref, acc_ref, *, tk,
                            matmul_dtype):
    # Grid = (N, spatial_tiles, C//tk); reduction (k) axis last.
    # x_ref: (1, tk, T)  k-th C_in slice of the spatial tile
    # w_ref: (C, tk)     k-th weight slice
    # acc_ref: (C, T) f32 accumulator (resident across the k axis)
    k = pl.program_id(2)

    @pl.when(k == 0)
    def _():
        acc_ref[...] = jnp.zeros_like(acc_ref)

    x = x_ref[0]                                      # (tk, T)
    lhs = w_ref[...]
    rhs = x
    if matmul_dtype is not None:
        lhs = lhs.astype(matmul_dtype)
        rhs = rhs.astype(matmul_dtype)
    acc_ref[...] += jnp.dot(lhs, rhs, preferred_element_type=jnp.float32)
    # Residual: C_out == C_in, so this x slice adds onto output rows
    # [k*tk, (k+1)*tk) only.
    row0 = pl.multiple_of(k * tk, tk)
    acc_ref[pl.ds(row0, tk), :] += x.astype(jnp.float32)

    @pl.when(k == pl.num_programs(2) - 1)
    def _():
        o_ref[0] = (acc_ref[...] + b_ref[...]).astype(o_ref.dtype)


def residual_pointwise(x_nchw, weight, bias, *, matmul_dtype="auto"):
    """out = Conv2d_1x1(x) + x; NCHW in / NCHW out, no layout transposes,
    no wrapper-side pad/slice passes."""
    N, C, H, W = x_nchw.shape
    HW = H * W
    # Free reshape: NCHW memory layout is already (N, C, H*W)-contiguous.
    x3d = x_nchw.reshape(N, C, HW)

    if matmul_dtype == "auto":
        # bf16 MXU path is the main compute-side win once the 1x1 conv gets
        # compute-bound; neutral for small, memory-bound C.
        matmul_dtype = jnp.bfloat16 if C >= 512 else None

    x_bytes = jnp.dtype(x3d.dtype).itemsize
    w_dtype = x3d.dtype if matmul_dtype is None else matmul_dtype
    w = weight.astype(w_dtype)                        # (C_out, C_in)
    w_bytes = jnp.dtype(w_dtype).itemsize
    b = bias.reshape(C, 1).astype(jnp.float32)        # f32 bias column

    vmem_budget, cores = _device_budget()

    # K-tile the contraction only when the resident (C, C) weight would blow
    # the (v7x) VMEM budget; requires C to split cleanly on the channel axis.
    ktile = 0
    if C * C * w_bytes > 8 * 1024 * 1024 and C % 256 == 0:
        ktile = 512 if C % 512 == 0 else 256

    t = _pick_spatial_tile(HW, N, C, x_bytes, w_bytes, vmem_budget, cores, ktile)
    n_sp = pl.cdiv(HW, t)   # ragged last block handled by Pallas masking
    out_shape = jax.ShapeDtypeStruct((N, C, HW), x3d.dtype)
    single_buf_w = C * C * w_bytes >= (2 * 1024 * 1024)

    if ktile:
        kernel = functools.partial(_residual_kernel_ktiled, tk=ktile,
                                   matmul_dtype=matmul_dtype)
        out3d = pl.pallas_call(
            kernel,
            out_shape=out_shape,
            grid_spec=pltpu.PrefetchScalarGridSpec(
                num_scalar_prefetch=0,
                grid=(N, n_sp, C // ktile),
                in_specs=[
                    pl.BlockSpec((1, ktile, t), lambda n, j, k: (n, k, j)),
                    pl.BlockSpec((C, ktile), lambda n, j, k: (0, k)),
                    _resident_spec((C, 1), lambda n, j, k: (0, 0), True),
                ],
                out_specs=pl.BlockSpec((1, C, t), lambda n, j, k: (n, 0, j)),
                scratch_shapes=[pltpu.VMEM((C, t), jnp.float32)],
            ),
            compiler_params=pltpu.CompilerParams(
                dimension_semantics=("parallel", "parallel", "arbitrary"),
                vmem_limit_bytes=vmem_budget,
            ),
        )(x3d, w, b)
    else:
        kernel = functools.partial(_residual_kernel,
                                   use_vpu_madd=(C <= 8),
                                   matmul_dtype=matmul_dtype)
        out3d = pl.pallas_call(
            kernel,
            out_shape=out_shape,
            grid_spec=pltpu.PrefetchScalarGridSpec(
                num_scalar_prefetch=0,
                grid=(N, n_sp),
                in_specs=[
                    pl.BlockSpec((1, C, t), lambda n, j: (n, 0, j)),
                    _resident_spec((C, C), lambda n, j: (0, 0), single_buf_w),
                    _resident_spec((C, 1), lambda n, j: (0, 0), single_buf_w),
                ],
                out_specs=pl.BlockSpec((1, C, t), lambda n, j: (n, 0, j)),
            ),
            compiler_params=pltpu.CompilerParams(
                dimension_semantics=("parallel", "parallel"),
                vmem_limit_bytes=vmem_budget,
            ),
        )(x3d, w, b)

    return out3d.reshape(N, C, H, W)


if __name__ == "__main__":
    key = jax.random.PRNGKey(0)
    kx, kw, kb = jax.random.split(key, 3)

    N, C, H, W = 2, 4, 16, 16
    x = jax.random.normal(kx, (N, C, H, W), dtype=jnp.float32)

    # Deterministic synthetic params for fn = Conv2d(C, C, kernel_size=1)
    fan_in = C  # 1x1 kernel
    bound = 1.0 / (fan_in ** 0.5)
    weight = jax.random.uniform(kw, (C, C), jnp.float32, -bound, bound)
    bias = jax.random.uniform(kb, (C,), jnp.float32, -bound, bound)

    # TODO(synk): non-zero drop_path_rate (training-time stochastic depth) is
    # not implemented; this kernel covers the drop_path = Identity config.
    out = residual_pointwise(x, weight, bias)
    out = jax.block_until_ready(out)

    # Pure-JAX reference: fn(x) + x with fn = 1x1 conv (drop_path = Identity).
    ref = jnp.einsum("oc,nchw->nohw", weight, x) + bias[None, :, None, None] + x
    assert out.shape == (N, C, H, W)
    assert jnp.allclose(out, ref, atol=1e-5, rtol=1e-5)

    print("KERNEL_OK")
</pallas_src>

<mosaic_0001>
module attributes {stable_mosaic.version = 11 : i64} {
  func.func @_residual_kernel(%arg0: i32, %arg1: i32, %arg2: memref<1x4x256xf32, #tpu.memory_space<vmem>>, %arg3: memref<4x4xf32, #tpu.memory_space<vmem>>, %arg4: memref<4x1xf32, #tpu.memory_space<vmem>>, %arg5: memref<1x4x256xf32, #tpu.memory_space<vmem>>) attributes {dimension_semantics = [#tpu.dimension_semantics<parallel>, #tpu.dimension_semantics<parallel>], iteration_bounds = array<i64: 2, 1>, scalar_prefetch = 0 : i64, scratch_operands = 0 : i64, tpu.core_type = #tpu.core_type<tc>, window_params = [{transform_indices = @transform_0, window_bounds = array<i64: 1, 4, 256>}, {pipeline_mode = #tpu.pipeline_mode<synchronous>, transform_indices = @transform_1, window_bounds = array<i64: 4, 4>}, {pipeline_mode = #tpu.pipeline_mode<synchronous>, transform_indices = @transform_2, window_bounds = array<i64: 4, 1>}, {transform_indices = @transform_3, window_bounds = array<i64: 1, 4, 256>}]} {
    %c0 = arith.constant 0 : index
    %c0_0 = arith.constant 0 : index
    %c0_1 = arith.constant 0 : index
    %0 = vector.load %arg2[%c0, %c0_0, %c0_1] : memref<1x4x256xf32, #tpu.memory_space<vmem>>, vector<1x4x256xf32>
    %1 = vector.shape_cast %0 : vector<1x4x256xf32> to vector<4x256xf32>
    %c0_2 = arith.constant 0 : index
    %c0_3 = arith.constant 0 : index
    %2 = vector.load %arg3[%c0_2, %c0_3] : memref<4x4xf32, #tpu.memory_space<vmem>>, vector<4x4xf32>
    %cst = arith.constant 0.000000e+00 : f32
    %3 = vector.broadcast %cst : f32 to vector<4x256xf32>
    %4 = vector.extract_strided_slice %2 {offsets = [0, 0], sizes = [4, 1], strides = [1, 1]} : vector<4x4xf32> to vector<4x1xf32>
    %5 = vector.extract_strided_slice %1 {offsets = [0, 0], sizes = [1, 256], strides = [1, 1]} : vector<4x256xf32> to vector<1x256xf32>
    %6 = vector.broadcast %4 : vector<4x1xf32> to vector<4x256xf32>
    %7 = vector.broadcast %5 : vector<1x256xf32> to vector<4x256xf32>
    %8 = arith.mulf %6, %7 : vector<4x256xf32>
    %9 = arith.addf %3, %8 : vector<4x256xf32>
    %10 = vector.extract_strided_slice %2 {offsets = [0, 1], sizes = [4, 1], strides = [1, 1]} : vector<4x4xf32> to vector<4x1xf32>
    %11 = vector.extract_strided_slice %1 {offsets = [1, 0], sizes = [1, 256], strides = [1, 1]} : vector<4x256xf32> to vector<1x256xf32>
    %12 = vector.broadcast %10 : vector<4x1xf32> to vector<4x256xf32>
    %13 = vector.broadcast %11 : vector<1x256xf32> to vector<4x256xf32>
    %14 = arith.mulf %12, %13 : vector<4x256xf32>
    %15 = arith.addf %9, %14 : vector<4x256xf32>
    %16 = vector.extract_strided_slice %2 {offsets = [0, 2], sizes = [4, 1], strides = [1, 1]} : vector<4x4xf32> to vector<4x1xf32>
    %17 = vector.extract_strided_slice %1 {offsets = [2, 0], sizes = [1, 256], strides = [1, 1]} : vector<4x256xf32> to vector<1x256xf32>
    %18 = vector.broadcast %16 : vector<4x1xf32> to vector<4x256xf32>
    %19 = vector.broadcast %17 : vector<1x256xf32> to vector<4x256xf32>
    %20 = arith.mulf %18, %19 : vector<4x256xf32>
    %21 = arith.addf %15, %20 : vector<4x256xf32>
    %22 = vector.extract_strided_slice %2 {offsets = [0, 3], sizes = [4, 1], strides = [1, 1]} : vector<4x4xf32> to vector<4x1xf32>
    %23 = vector.extract_strided_slice %1 {offsets = [3, 0], sizes = [1, 256], strides = [1, 1]} : vector<4x256xf32> to vector<1x256xf32>
    %24 = vector.broadcast %22 : vector<4x1xf32> to vector<4x256xf32>
    %25 = vector.broadcast %23 : vector<1x256xf32> to vector<4x256xf32>
    %26 = arith.mulf %24, %25 : vector<4x256xf32>
    %27 = arith.addf %21, %26 : vector<4x256xf32>
    %c0_4 = arith.constant 0 : index
    %c0_5 = arith.constant 0 : index
    %28 = vector.load %arg4[%c0_4, %c0_5] : memref<4x1xf32, #tpu.memory_space<vmem>>, vector<4x1xf32>
    %29 = vector.broadcast %28 : vector<4x1xf32> to vector<4x256xf32>
    %30 = arith.addf %27, %29 : vector<4x256xf32>
    %31 = arith.addf %30, %1 : vector<4x256xf32>
    %c0_6 = arith.constant 0 : index
    %c0_7 = arith.constant 0 : index
    %c0_8 = arith.constant 0 : index
    %32 = vector.load %arg5[%c0_6, %c0_7, %c0_8] : memref<1x4x256xf32, #tpu.memory_space<vmem>>, vector<1x4x256xf32>
    %33 = vector.shape_cast %32 : vector<1x4x256xf32> to vector<4x256xf32>
    %34 = vector.shape_cast %31 : vector<4x256xf32> to vector<1x4x256xf32>
    tpu.vector_store %arg5[%c0_6, %c0_7, %c0_8], %34 {strides = array<i32>} : memref<1x4x256xf32, #tpu.memory_space<vmem>>, vector<1x4x256xf32>,
    return
  }
  func.func @transform_0(%arg0: i32, %arg1: i32) -> (i32, i32, i32) {
    %c0_i32 = arith.constant 0 : i32
    %c0_i32_0 = arith.constant 0 : i32
    return %arg0, %c0_i32, %arg1 : i32, i32, i32
  }
  func.func @transform_1(%arg0: i32, %arg1: i32) -> (i32, i32) {
    %c0_i32 = arith.constant 0 : i32
    %c0_i32_0 = arith.constant 0 : i32
    %c0_i32_1 = arith.constant 0 : i32
    return %c0_i32, %c0_i32_0 : i32, i32
  }
  func.func @transform_2(%arg0: i32, %arg1: i32) -> (i32, i32) {
    %c0_i32 = arith.constant 0 : i32
    %c0_i32_0 = arith.constant 0 : i32
    %c0_i32_1 = arith.constant 0 : i32
    return %c0_i32, %c0_i32_0 : i32, i32
  }
  func.func @transform_3(%arg0: i32, %arg1: i32) -> (i32, i32, i32) {
    %c0_i32 = arith.constant 0 : i32
    %c0_i32_0 = arith.constant 0 : i32
    return %arg0, %c0_i32, %arg1 : i32, i32, i32
  }
}

</mosaic_0001>

<bundles_post_ra>
// kernel: tpu_custom_call.1
= control target key start
LH: loop header
LB: loop body
LE: loop exit
PB: predicated region body
PF: predicated region fallthrough
CT: control target
= control target key end

     0   :  { %8 = vsyncpa [#allocation3], 0  ;;  %s751_s0 = inlined_call_operand.hbm [shape: f32[2,4,256], index: 0, kind: input, shape index: {}]   ;;  %s752_s1 = inlined_call_operand.vmem [shape: f32[4,4], index: 1, kind: input, shape index: {}]   ;;  %s753_s2 = inlined_call_operand.vmem [shape: f32[4,1], index: 2, kind: input, shape index: {}]   ;;  %s754_s3 = inlined_call_operand.hbm [shape: f32[2,4,256], index: 3, kind: output, shape index: {}]  }
   0x1   :  { %10 = vsyncpa [#allocation3 + $0x1], 0 }
   0x2   :  { %11 = vsyncpa [#allocation4], 0 }
   0x3   :  { %13 = vsyncpa [#allocation4 + $0x1], 0  ;;  %s621_s12 = smov 0   ;;  %s623_s13 = smov 0  }
   0x4   :  { %s625_s14 = smov 0   ;;  %s627_s15 = smov 0  }
   0x5   :  { %s629_s16 = smov 0   ;;  %s631_s17 = smov 0  }
   0x6 LB: > { %s394_s18 = sadd.s32 4294967295, %s595_s17   ;;  %s395_s19 = sadd.s32 4294967294, %s595_s17   ;;  %s595_s17 = sphi %s631_s17, %s19_s17   ;;  %s591_s16 = sphi %s629_s16, %s763_s16   ;;  %s587_s15 = sphi %s627_s15, %s762_s15   ;;  %s583_s14 = sphi %s625_s14, %s761_s14   ;;  %s579_s13 = sphi %s623_s13, %s760_s13   ;;  %s575_s12 = sphi %s621_s12, %s759_s12  }
   0x7   : > { %s31_s20 = sadd.s32 1, %s591_s16  ;;  %s40_s21 = sadd.s32 1, %s583_s14 }
   0x8   : > { %p33_p0 = scmp.ge.s32.totalorder %s31_s20, 2  ;;  %p47_p1 = scmp.ne.s32.totalorder %s583_s14, %s579_s13 }
   0x9   : > { %p48_p2 = scmp.eq.s32.totalorder %s595_s17, 0  ;;  %p53_p3 = scmp.ne.s32.totalorder %s579_s13, %s575_s12 }
   0xa   : > { %s765_s20 = smov (%p33_p0, %s31_s20), 0  ;;  %p54_p5 = scmp.eq.s32.totalorder %s394_s18, 0 }
   0xb   : > { %p662_p4 = por %p48_p2, %p47_p1  ;;  %s35_s23 = ssub.s32 %s591_s16, %s765_s20 }
   0xc   : > { %p121_p6 = scmp.eq.s32.totalorder %s394_s18, 1  ;;  %p38_p7 = scmp.eq.s32.totalorder %s35_s23, 0 }
   0xd   : > { %p668_p8 = por %p54_p5, %p53_p3  ;;  %p127_p10 = scmp.eq.s32.totalorder %s395_s19, 1 }
   0xe   : > { %p672_p9 = por %p121_p6, %p47_p1  ;;  %p397_p12 = scmp.ge.s32.totalorder %s595_s17, 2 }
   0xf   : > { %s677_s26 = scalar_select %p38_p7, %s583_s14, %s40_s21  }
  0x10   : > { %p679_p11 = por %p127_p10, %p53_p3  ;;  %p423_p13 = scmp.lt.s32.totalorder %s595_s17, 2 }
  0x11   : > { %s153_s28 = sand.u32 1, %s583_s14   ;;  %s409_s30 = sshll.u32 %s591_s16, 3 }
  0x12   : > { %s398_s29 = sshll.u32 %s153_s28, 3  ;;  %s164_s6 = scalar_lea.hbm %s751_s0, %s409_s30 }
  0x13   : > { %s157_s7 = scalar_lea.vmem [#allocation2], %s398_s29  ;;  %s166_s9 = sshll.u32 %s164_s6, 4  ;;  %s167_s9 = int_to_ptr.hbm [resolvable:$true] %s166_s9 }
  0x14   : > { %s168_s8 = sshll.u32 %s157_s7, 4  ;;  %p416_p0 = pnand %p423_p13, %p662_p4  ;;  %s169_s8 = int_to_ptr.vmem [resolvable:$true] %s168_s8 }
  0x15   : > { %p401_p1 = scmp.ge.s32.totalorder %s595_s17, 1  ;;  %p173_p2 = scmp.lt.s32.totalorder %s595_s17, 3 }
  0x16   : > { %s154_s10 = scalar_lea.sflag [#allocation3], %s153_s28 }
  0x17   : > { %418 = dma.hbm_to_vmem [thread:$0]  (!%p416_p0), %s167_s9, 128, %s169_s8, %s154_s10  }
  0x18   : > { %p174_p3 = pnand %p401_p1, %p173_p2 }
  0x19   : > { %s695_s11 = sand.u32 (!%p174_p3), 1, %s579_s13  }
  0x1a   : > { %177 = sbr.rel (%p174_p3) target bundleno = 176 (0xb0), region = 32  ;;  %s402_s18 = sshll.u32 (!%p174_p3), %s695_s11, 3 }
  0x1b   : > { %s180_s19 = scalar_lea.sflag (!%p174_p3), [#allocation3], %s695_s11  ;;  %s183_s21 = scalar_lea.vmem (!%p174_p3), [#allocation2], %s402_s18 }
  0x1f   : > { %566 = dma.done.wait (%p668_p8), %s180_s19, 128  }
  0x20   : > { %568 = vsyncadd (%p668_p8), %s180_s19, 4294967168  ;;  %v597_v0 = vmov 0   ;;  %v598_v1 = vmov 2   ;;  %v209_v2 = vld [vmem:[%s183_s21] sm:$0xff]  ;;  %v210_v3 = vld [vmem:[%s752_s1] sm:$0xf] }
  0x21   : > { %477 = vset.pattern.permute.xlu0 %v597_v0  ;;  %479 = vset.pattern.permute.xlu1 %v598_v1  ;;  %v269_v4 = vld [vmem:[%s753_s2] sm:$0xf]  ;;  %277 = vst [vmem:[#allocation1] ss:$2 sm:$0xff] %v209_v2  ;;  %v599_v5 = vmov 1   ;;  %v600_v6 = vmov 3  }
  0x22   : > { %481 = vset.pattern.permute.xlu2 %v597_v0  ;;  %213 = vperm.xlu0 %477, %v210_v3   ;;  %v217_v9 = vperm.slane %v209_v2, 0  ;;  %v218_v10 = vperm.slane %v209_v2, 4  ;;  %v231_v11 = vperm.slane %v209_v2, 1  ;;  %v232_v12 = vperm.slane %v209_v2, 5  ;;  %s410_s24 = sshll.u32 %s587_s15, 3  ;;  %s206_s6 = scalar_lea.vmem [#allocation5], %s402_s18 }
  0x23   : > { %242 = vperm.xlu1 %479, %v210_v3   ;;  %272 = vperm.xlu2 %481, %v269_v4   ;;  %v245_v13 = vperm.slane %v209_v2, 2  ;;  %v246_v14 = vperm.slane %v209_v2, 6  ;;  %v259_v15 = vperm.slane %v209_v2, 3  ;;  %v260_v16 = vperm.slane %v209_v2, 7  ;;  %s305_s5 = scalar_lea.hbm %s754_s3, %s410_s24  ;;  %s307_s7 = sshll.u32 %s206_s6, 4  ;;  %s308_s7 = int_to_ptr.vmem [resolvable:$true] %s307_s7 }
  0x24   : > { %v221_v17 = vperm.slane %v217_v9, 0  ;;  %v222_v18 = vperm.slane %v218_v10, 0  ;;  %v235_v19 = vperm.slane %v231_v11, 1  ;;  %v236_v20 = vperm.slane %v232_v12, 1  ;;  %s309_s8 = sshll.u32 %s305_s5, 4  ;;  %s292_s15 = scalar_lea.sflag [#allocation4], %s695_s11  ;;  %s310_s8 = int_to_ptr.hbm [resolvable:$true] %s309_s8 }
  0x25   : > { %v249_v21 = vperm.slane %v245_v13, 2  ;;  %v250_v22 = vperm.slane %v246_v14, 2  ;;  %v263_v23 = vperm.slane %v259_v15, 3  ;;  %v264_v24 = vperm.slane %v260_v16, 3  ;;  %s527_s9 = sshra.s32 %s310_s8, 4  ;;  %s533_s18 = scalar_lea.hbm %s754_s3, 16  ;;  %s528_s9 = int_to_ptr.hbm [resolvable:$true] %s527_s9 }
  0x26   : > { %vm287_vm0 = vcmask 1043456   ;;  %s529_s10 = scalar_lea.hbm %s528_s9, 8  ;;  %p534_p7 = scmp.lt.s32.totalorder %s528_s9, %s754_s3 }
  0x27   : > { %p530_p4 = scmp.ne.s32.totalorder %s528_s9, %s529_s10  ;;  %p535_p8 = scmp.lt.s32.totalorder %s533_s18, %s529_s10 }
  0x28   : > { %v279_v42 = vld.sshfl [vmem:[#allocation1 + $0x8] sm:$0xff pattern:$0x75316420]  ;;  %v278_v45 = vld.sshfl [vmem:[#allocation1] sm:$0xff pattern:$0x75316420] }
  0x29   : > { %p531_p5 = pnand %p530_p4, %p672_p9  ;;  %p536_p10 = por %p535_p8, %p534_p7 }
  0x2a   : > { %478 = vset.pattern.permute.xlu0 %v599_v5 }
  0x2b   : > { %480 = vset.pattern.permute.xlu1 %v600_v6  ;;  %228 = vperm.xlu0 %478, %v210_v3   ;;  %p532_p6 = pneg %p531_p5 }
  0x2c   : > { %256 = vperm.xlu1 %480, %v210_v3  }
  0x2d   : > { %p537_p13 = pnand %p536_p10, %p532_p6 }
  0x33   : > { %482 = vset.pattern.permute.xlu0 %v597_v0 }
  0x7d   : > { %v273_v39 = vpop.permute.xlu2 %272 }
  0x94   : > { %v214_v7 = vpop.permute.xlu0 %213 }
  0x95   : > { %v243_v8 = vpop.permute.xlu1 %242  ;;  %v223_v27 = vmul.f32 %v221_v17, %v214_v7  ;;  %v224_v28 = vmul.f32 %v222_v18, %v214_v7 }
  0x96   : > { %v251_v31 = vmul.f32 %v249_v21, %v243_v8  ;;  %v252_v32 = vmul.f32 %v250_v22, %v243_v8 }
  0x9d   : > { %v229_v25 = vpop.permute.xlu0 %228 }
  0x9e   : > { %v257_v26 = vpop.permute.xlu1 %256  ;;  %v237_v29 = vmul.f32 %v235_v19, %v229_v25  ;;  %v238_v30 = vmul.f32 %v236_v20, %v229_v25 }
  0x9f   : > { %v265_v35 = vmul.f32 %v263_v23, %v257_v26  ;;  %v266_v36 = vmul.f32 %v264_v24, %v257_v26 }
  0xa0   : > { %v239_v33 = vadd.f32 %v237_v29, %v223_v27  ;;  %v240_v34 = vadd.f32 %v238_v30, %v224_v28 }
  0xa2   : > { %v253_v37 = vadd.f32 %v251_v31, %v239_v33  ;;  %v254_v38 = vadd.f32 %v252_v32, %v240_v34 }
  0xa4   : > { %v267_v40 = vadd.f32 %v265_v35, %v253_v37  ;;  %v268_v41 = vadd.f32 %v266_v36, %v254_v38 }
  0xa6   : > { %v275_v43 = vadd.f32 %v273_v39, %v267_v40  ;;  %v276_v44 = vadd.f32 %v273_v39, %v268_v41 }
  0xa8   : > { %v283_v46 = vadd.f32 %v279_v42, %v276_v44  ;;  %v282_v47 = vadd.f32 %v278_v45, %v275_v43 }
  0xaa   : > { %v286_v48 = vrot.slane %v283_v46, 4 }
  0xac   : > { %v288_v49 = vsel %vm287_vm0, %v282_v47, %v286_v48 }
  0xad   : > { %290 = vst [vmem:[%s206_s6] sm:$0xff] %v288_v49 }
  0xae   : > { %540 = shalt.err (!%p537_p13)
}
  0xaf   : > { %413 = dma.vmem_to_hbm [thread:$0]  (%p672_p9), %s308_s7, 128, %s310_s8, %s292_s15  }
  0xb0 PF: > { %s321_s11 = sand.u32 1, %s575_s12   ;;  %p420_p0 = pnand %p397_p12, %p679_p11 }
  0xb1   : > { %s322_s28 = scalar_lea.sflag [#allocation4], %s321_s11 }
  0xb2   : > { %p421_p1 = pneg %p420_p0 }
  0xb4   : > { %570 = dma.done.wait (%p421_p1), %s322_s28, 128  }
  0xb5   : > { %572 = vsyncadd (%p421_p1), %s322_s28, 4294967168  ;;  %s19_s17 = sadd.s32 1, %s595_s17   ;;  %s759_s12 = smov %s579_s13 }
  0xb6   : > { %p16_p2 = scmp.ge.s32.totalorder %s19_s17, 4   ;;  %s760_s13 = smov %s583_s14 }
  0xb7   : > { %s761_s14 = smov %s677_s26  ;;  %s762_s15 = smov %s591_s16 }
  0xb8   : > { %s763_s16 = smov %s765_s20  ;;  %18 = sbr.rel (!%p16_p2) target bundleno = 6 (0x6), region = 77 }
  0xbd   :  { %328 = vsyncpa [#allocation3], 1 }
  0xbe   :  { %330 = vsyncpa [#allocation3 + $0x1], 1 }
  0xbf   :  { %331 = vsyncpa [#allocation4], 1 }
  0xc0   :  { %333 = vsyncpa [#allocation4 + $0x1], 1 }

</bundles_post_ra>
